<compile_context>
chip_gen: v6e
topology: v6e:2x2x1
jax: 0.10.0
libtpu: 0.0.40
codegen_flags: <defaults>
</compile_context>

<pallas_src>
import jax
import jax.numpy as jnp
from jax import lax
from jax.experimental import pallas as pl
from jax.experimental.pallas import tpu as pltpu


def _camera_transf_kernel(d_ref, x_ref, o_ref):
    # d_ref: (3,)    f32 in SMEM  -> translation scalars d0, d1, d2
    # x_ref: (4, L)  f32 in VMEM  -> B poses packed column-wise, L = 4*B
    # o_ref: (4, L)  f32 in VMEM
    x = x_ref[...]                       # (4, L)
    bottom = x[3:4, :]                   # (1, L): bottom row of every pose

    # Broadcast d down the sublane (row) axis: row i gets d_i for i<3, 0 for i==3.
    row = lax.broadcasted_iota(jnp.int32, x.shape, 0)
    d_bcast = jnp.where(
        row == 0, d_ref[0],
        jnp.where(row == 1, d_ref[1],
                  jnp.where(row == 2, d_ref[2], jnp.float32(0.0))))

    # t_0 @ x  ==  x + d·e3^T·x  ==  x + d_bcast * bottom   (pure VPU rank-1 update)
    o_ref[...] = x + d_bcast * bottom


def camera_transf_translation_only(d, x):
    """d: (3,) f32 translation. x: (4,4) or (B,4,4) f32 pose(s). Returns same shape as x."""
    d = d.astype(jnp.float32)
    x = x.astype(jnp.float32)

    single = (x.ndim == 2)
    xb = x[None] if single else x            # (B, 4, 4)
    B = xb.shape[0]

    # Lane-dense packing: (B,4,4) -> (4, 4*B).  x_packed[i, 4*b + j] = xb[b, i, j].
    # For B a multiple of 32 the output last dim is a multiple of 128 lanes.
    x_packed = jnp.transpose(xb, (1, 0, 2)).reshape(4, 4 * B)

    out_packed = pl.pallas_call(
        _camera_transf_kernel,
        out_shape=jax.ShapeDtypeStruct((4, 4 * B), jnp.float32),
        in_specs=[
            pl.BlockSpec(memory_space=pltpu.MemorySpace.SMEM),   # d scalars
            pl.BlockSpec(memory_space=pltpu.MemorySpace.VMEM),   # packed poses
        ],
        out_specs=pl.BlockSpec(memory_space=pltpu.MemorySpace.VMEM),
    )(d, x_packed)

    out = out_packed.reshape(4, B, 4).transpose(1, 0, 2)          # (B, 4, 4)
    return out[0] if single else out


def _reference(d, x):
    t0 = jnp.eye(4, dtype=jnp.float32).at[:3, 3].set(d)
    return t0 @ x   # broadcasts over leading batch dims like torch.matmul


if __name__ == "__main__":
    key = jax.random.PRNGKey(0)
    kd, kx1, kx2 = jax.random.split(key, 3)

    # Parameter init matches nn.Parameter(torch.normal(0, 1e-6, size=(3,))).
    d = 1e-6 * jax.random.normal(kd, (3,), dtype=jnp.float32)

    # Single pose (exactly the PyTorch forward) and a small batch of poses
    # (32 poses -> 128 lanes, fully lane-dense output tile).
    x_single = jax.random.normal(kx1, (4, 4), dtype=jnp.float32)
    x_batch = jax.random.normal(kx2, (32, 4, 4), dtype=jnp.float32)

    out_s = jax.block_until_ready(camera_transf_translation_only(d, x_single))
    out_b = jax.block_until_ready(camera_transf_translation_only(d, x_batch))

    ref_s = _reference(d, x_single)
    ref_b = _reference(d, x_batch)

    assert out_s.shape == (4, 4) and out_s.dtype == jnp.float32
    assert out_b.shape == (32, 4, 4) and out_b.dtype == jnp.float32
    assert jnp.allclose(out_s, ref_s, atol=1e-6, rtol=1e-6)
    assert jnp.allclose(out_b, ref_b, atol=1e-6, rtol=1e-6)

    print("KERNEL_OK")
</pallas_src>

<mosaic_0001>
module attributes {stable_mosaic.version = 11 : i64} {
  func.func @_camera_transf_kernel(%arg0: memref<3xf32, #tpu.memory_space<smem>>, %arg1: memref<4x4xf32, #tpu.memory_space<vmem>>, %arg2: memref<4x4xf32, #tpu.memory_space<vmem>>) attributes {dimension_semantics = [], scalar_prefetch = 0 : i64, scratch_operands = 0 : i64, tpu.core_type = #tpu.core_type<tc>} {
    %c0 = arith.constant 0 : index
    %c0_0 = arith.constant 0 : index
    %0 = vector.load %arg1[%c0, %c0_0] : memref<4x4xf32, #tpu.memory_space<vmem>>, vector<4x4xf32>
    %1 = vector.extract_strided_slice %0 {offsets = [3, 0], sizes = [1, 4], strides = [1, 1]} : vector<4x4xf32> to vector<1x4xf32>
    %2 = tpu.iota {dimensions = array<i32: 0>} : vector<4x4xi32>
    %c0_i32 = arith.constant 0 : i32
    %3 = vector.broadcast %c0_i32 : i32 to vector<4x4xi32>
    %4 = arith.cmpi eq, %2, %3 : vector<4x4xi32>
    %c0_1 = arith.constant 0 : index
    %5 = memref.load %arg0[%c0_1] : memref<3xf32, #tpu.memory_space<smem>>
    %c1_i32 = arith.constant 1 : i32
    %6 = vector.broadcast %c1_i32 : i32 to vector<4x4xi32>
    %7 = arith.cmpi eq, %2, %6 : vector<4x4xi32>
    %c1 = arith.constant 1 : index
    %8 = memref.load %arg0[%c1] : memref<3xf32, #tpu.memory_space<smem>>
    %c2_i32 = arith.constant 2 : i32
    %9 = vector.broadcast %c2_i32 : i32 to vector<4x4xi32>
    %10 = arith.cmpi eq, %2, %9 : vector<4x4xi32>
    %c2 = arith.constant 2 : index
    %11 = memref.load %arg0[%c2] : memref<3xf32, #tpu.memory_space<smem>>
    %cst = arith.constant 0.000000e+00 : f32
    %12 = vector.broadcast %11 : f32 to vector<4x4xf32>
    %13 = vector.broadcast %cst : f32 to vector<4x4xf32>
    %14 = arith.select %10, %12, %13 : vector<4x4xi1>, vector<4x4xf32>
    %15 = vector.broadcast %8 : f32 to vector<4x4xf32>
    %16 = arith.select %7, %15, %14 : vector<4x4xi1>, vector<4x4xf32>
    %17 = vector.broadcast %5 : f32 to vector<4x4xf32>
    %18 = arith.select %4, %17, %16 : vector<4x4xi1>, vector<4x4xf32>
    %19 = vector.broadcast %1 : vector<1x4xf32> to vector<4x4xf32>
    %20 = arith.mulf %18, %19 : vector<4x4xf32>
    %21 = arith.addf %0, %20 : vector<4x4xf32>
    %c0_2 = arith.constant 0 : index
    %c0_3 = arith.constant 0 : index
    %22 = vector.load %arg2[%c0_2, %c0_3] : memref<4x4xf32, #tpu.memory_space<vmem>>, vector<4x4xf32>
    tpu.vector_store %arg2[%c0_2, %c0_3], %21 {strides = array<i32>} : memref<4x4xf32, #tpu.memory_space<vmem>>, vector<4x4xf32>,
    return
  }
}

</mosaic_0001>

<bundles_post_ra>
// kernel: tpu_custom_call.1
= control target key start
LH: loop header
LB: loop body
LE: loop exit
PB: predicated region body
PF: predicated region fallthrough
CT: control target
= control target key end

     0   :  { %7 = vsyncpa [#allocation5], 0  ;;  %s160_s0 = inlined_call_operand.hbm [shape: f32[3], index: 0, kind: input, shape index: {}]   ;;  %s161_s1 = inlined_call_operand.hbm [shape: f32[4,4], index: 1, kind: input, shape index: {}]   ;;  %s162_s2 = inlined_call_operand.hbm [shape: f32[4,4], index: 2, kind: output, shape index: {}]  }
   0x1   :  { %8 = vsyncpa [#allocation3], 0 }
   0x2   :  { %9 = vsyncpa [#allocation4], 0  ;;  %s133_s9 = smov [#allocation2]   ;;  %s134_s12 = smov [#allocation6]  }
   0x3   :  { %17 = dma.hbm_to_smem %s160_s0, 16, %s133_s9, [#allocation5]  }
   0x4   :  { %s24_s13 = sshll.u32 %s134_s12, 4  ;;  %s25_s13 = int_to_ptr.vmem [resolvable:$true] %s24_s13 }
   0x5   :  { %s95_s14 = scalar_lea.vmem %s25_s13, 64  ;;  %p100_p1 = scmp.lt.s32.totalorder %s25_s13, %s25_s13 }
   0x6   :  { %p96_p0 = scmp.ne.s32.totalorder %s25_s13, %s95_s14  ;;  %p101_p2 = scmp.lt.s32.totalorder %s95_s14, %s95_s14 }
   0x8   :  { %p102_p3 = por %p101_p2, %p100_p1 }
   0xa   :  { %p103_p4 = pnand %p102_p3, %p96_p0 }
   0xc   :  { %106 = shalt.err (!%p103_p4)
}
   0xd   :  { %27 = dma.hbm_to_vmem [thread:$0]  %s161_s1, 64, %s25_s13, [#allocation3]  }
   0xe   :  { %127 = dma.done.wait [#allocation5], 16  }
   0xf   :  { %128 = vsyncadd [#allocation5], 4294967280 }
  0x10   :  { %129 = dma.done.wait [#allocation3], 64  }
  0x11   :  { %130 = vsyncadd [#allocation3], 4294967232 }
  0x12   :  { %34 = sfence }
  0x13   :  { %v36_v0 = vlaneseq  ;;  %s39_s0 = sld [smem:[#allocation2]]  ;;  %v35_v3 = vld [vmem:[#allocation6] sm:$0xf]  ;;  %s135_s1 = smov [#allocation7]   ;;  %vm56_vm3 = vcmask 27648  }
  0x14   :  { %s74_s17 = sld [smem:[#allocation2 + $0x1]]  ;;  %s64_s19 = sshll.u32 %s135_s1, 4  ;;  %s65_s19 = int_to_ptr.vmem [resolvable:$true] %s64_s19 }
  0x15   :  { %v37_v1 = vshrl.u32 %v36_v0, 7  ;;  %s75_s18 = sld [smem:[#allocation2 + $0x2]]  ;;  %s107_s20 = scalar_lea.vmem %s65_s19, 64 }
  0x16   :  { %p108_p5 = scmp.ne.s32.totalorder %s65_s19, %s107_s20  ;;  %p112_p6 = scmp.lt.s32.totalorder %s65_s19, %s65_s19 }
  0x17   :  { %v52_v2 = vsub.s32 3, %v37_v1  ;;  %vm42_vm0 = vcmp.eq.s32.totalorder %v37_v1, 2  ;;  %vm40_vm1 = vcmp.eq.s32.totalorder %v37_v1, 1  ;;  %vm38_vm2 = vcmp.eq.s32.totalorder %v37_v1, 0  ;;  %p113_p7 = scmp.lt.s32.totalorder %s107_s20, %s107_s20 }
  0x19   :  { %v48_v6 = vstv %s39_s0  ;;  %v53_v7 = vrot.slane %v35_v3, %v52_v2  ;;  %p114_p8 = por %p113_p7, %p112_p6 }
  0x1a   :  { %v46_v4 = vstv %s74_s17 }
  0x1b   :  { %v44_v5 = vstv %s75_s18  ;;  %p115_p9 = pnand %p114_p8, %p108_p5 }
  0x1c   :  { %v45_v8 = vsel %vm42_vm0, %v44_v5, 0.0 }
  0x1d   :  { %v47_v9 = vsel %vm40_vm1, %v46_v4, %v45_v8 }
  0x1e   :  { %v49_v10 = vsel %vm38_vm2, %v48_v6, %v47_v9 }
  0x1f   :  { %v54_v11 = vmul.f32 %v53_v7, %v49_v10 }
  0x21   :  { %v55_v12 = vadd.f32 %v54_v11, %v35_v3 }
  0x23   :  { %57 = vst.msk [vmem:[#allocation7] sm:$0xf] %vm56_vm3, %v55_v12 }
  0x24   :  { %118 = shalt.err (!%p115_p9)
}
  0x25   :  { %67 = dma.vmem_to_hbm [thread:$0]  %s65_s19, 64, %s162_s2, [#allocation4]  }
  0x26   :  { %131 = dma.done.wait [#allocation4], 64  }
  0x27   :  { %132 = vsyncadd [#allocation4], 4294967232 }
  0x28   :  { %71 = vsyncpa [#allocation3], 1 }
  0x29   :  { %72 = vsyncpa [#allocation4], 1 }
  0x2a   :  { %73 = vsyncpa [#allocation5], 1 }

</bundles_post_ra>
